<compile_context>
chip_gen: v6e
topology: v6e:2x2x1
jax: 0.10.0
libtpu: 0.0.40
codegen_flags: <defaults>
</compile_context>

<pallas_src>
import functools

import jax
import jax.numpy as jnp
from jax.experimental import pallas as pl
from jax.experimental.pallas import tpu as pltpu


def _round_up(n, m):
    return ((n + m - 1) // m) * m


# --------------------------------------------------------------------------
# Parameter slab layout + packing (done once, outside the kernel)
# --------------------------------------------------------------------------
def _make_layout(input_size, hidden_dim, n_layers, seq_len, fc1_out, output_size):
    """Static (python-int) layout: name -> (row_offset, rows, cols)."""
    entries = []
    for l in range(n_layers):
        in_l = input_size if l == 0 else hidden_dim
        entries.append((f"w_ihT_{l}", in_l, hidden_dim))       # (In_l, H)
        entries.append((f"w_hhT_{l}", hidden_dim, hidden_dim))  # (H, H)
        entries.append((f"bias_{l}", 1, hidden_dim))            # b_ih + b_hh
    entries.append(("fc1_wT", seq_len * hidden_dim, fc1_out))   # (T*H, 75)
    entries.append(("fc1_b", 1, fc1_out))
    entries.append(("fc2_wT", fc1_out, output_size))            # (75, O)
    entries.append(("fc2_b", 1, output_size))

    width = _round_up(max(cols for _, _, cols in entries), 128)  # lane-aligned
    layout = {}
    off = 0
    for name, rows, cols in entries:
        layout[name] = (off, rows, cols)
        off += _round_up(rows, 8)  # keep every slice sublane-aligned
    return layout, off, width


def pack_params(params, *, input_size, hidden_dim, n_layers, seq_len, output_size):
    """Pack all (pre-transposed) parameters into one (R, 128) f32 slab."""
    fc1_out = params["fc1_w"].shape[0]
    layout, total_rows, width = _make_layout(
        input_size, hidden_dim, n_layers, seq_len, fc1_out, output_size)

    slab = jnp.zeros((total_rows, width), jnp.float32)

    def put(s, name, arr2d):
        off, rows, cols = layout[name]
        assert arr2d.shape == (rows, cols), (name, arr2d.shape, (rows, cols))
        return s.at[off:off + rows, :cols].set(arr2d.astype(jnp.float32))

    for l in range(n_layers):
        w_ih, w_hh, b_ih, b_hh = params["rnn"][l]
        slab = put(slab, f"w_ihT_{l}", w_ih.T)
        slab = put(slab, f"w_hhT_{l}", w_hh.T)
        slab = put(slab, f"bias_{l}", (b_ih + b_hh).reshape(1, -1))  # fold biases
    slab = put(slab, "fc1_wT", params["fc1_w"].T)
    slab = put(slab, "fc1_b", params["fc1_b"].reshape(1, -1))
    slab = put(slab, "fc2_wT", params["fc2_w"].T)
    slab = put(slab, "fc2_b", params["fc2_b"].reshape(1, -1))
    return slab, layout, fc1_out


# --------------------------------------------------------------------------
# Kernel
# --------------------------------------------------------------------------
def _rnn_model_kernel(n_layers, seq_len, batch, hidden_dim, fc1_out, layout,
                      x_ref, slab_ref, out_ref):
    """Full forward pass in one kernel.

    x_ref    : (T*B, In0) f32, time-major (row t*B+b is x[b, t, :])
    slab_ref : (R, 128)   f32 packed parameters (see _make_layout)
    out_ref  : (B, O)     f32
    """
    B, T, H = batch, seq_len, hidden_dim

    def read(name):
        off, rows, cols = layout[name]
        return slab_ref[off:off + rows, :cols]   # static slice of VMEM ref

    inp_all = x_ref[...]                         # (T*B, In0)

    for l in range(n_layers):
        w_ihT = read(f"w_ihT_{l}")               # (In_l, H), pre-transposed
        w_hhT = read(f"w_hhT_{l}")               # (H, H),    pre-transposed
        bias = read(f"bias_{l}")                 # (1, H),    b_ih + b_hh

        # Whole-sequence input projection: ONE MXU op per layer.
        ih_all = jnp.dot(inp_all, w_ihT,
                         preferred_element_type=jnp.float32) + bias  # (T*B, H)

        h = jnp.zeros((B, H), dtype=jnp.float32)

        if l == n_layers - 1:
            # Last layer: fold fc1 into the recurrence (no flatten/concat).
            fc1_off, _, fc1_cols = layout["fc1_wT"]
            acc = jnp.zeros((B, fc1_out), dtype=jnp.float32)
            for t in range(T):
                h = jnp.tanh(
                    ih_all[t * B:(t + 1) * B, :]
                    + jnp.dot(h, w_hhT, preferred_element_type=jnp.float32))
                w1_t = slab_ref[fc1_off + t * H:fc1_off + (t + 1) * H, :fc1_cols]
                acc = acc + jnp.dot(h, w1_t, preferred_element_type=jnp.float32)
            h1 = acc + read("fc1_b")                                   # (B, 75)
            y = (jnp.dot(h1, read("fc2_wT"),
                         preferred_element_type=jnp.float32)
                 + read("fc2_b"))                                      # (B, O)
            out_ref[...] = y.astype(out_ref.dtype)
        else:
            outs = []
            for t in range(T):
                h = jnp.tanh(
                    ih_all[t * B:(t + 1) * B, :]
                    + jnp.dot(h, w_hhT, preferred_element_type=jnp.float32))
                outs.append(h)
            # Next layer's time-major input (once per layer, not per step).
            inp_all = jnp.concatenate(outs, axis=0)                    # (T*B, H)


# --------------------------------------------------------------------------
# Wrapper
# --------------------------------------------------------------------------
def rnn_model_forward(x, slab, layout, fc1_out, *, n_layers, hidden_dim,
                      output_size):
    B, T, In = x.shape
    # fc1 expects hidden_dim * 4 features after out.view(batch, -1).
    fc1_in = layout["fc1_wT"][1]
    if T * hidden_dim != fc1_in:
        raise ValueError(
            f"seq_len ({T}) * hidden_dim ({hidden_dim}) must equal fc1 input "
            f"size ({fc1_in}); the module requires seq_len == 4.")

    # Time-major flatten done by XLA in the wrapper: row t*B + b == x[b, t, :].
    x_tm = jnp.transpose(x, (1, 0, 2)).reshape(T * B, In)

    kernel = functools.partial(_rnn_model_kernel, n_layers, T, B, hidden_dim,
                               fc1_out, layout)
    return pl.pallas_call(
        kernel,
        out_shape=jax.ShapeDtypeStruct((B, output_size), jnp.float32),
        in_specs=[pl.BlockSpec(memory_space=pltpu.MemorySpace.VMEM),
                  pl.BlockSpec(memory_space=pltpu.MemorySpace.VMEM)],
        out_specs=pl.BlockSpec(memory_space=pltpu.MemorySpace.VMEM),
    )(x_tm, slab)


# --------------------------------------------------------------------------
# Param init (PyTorch-style uniform(-1/sqrt(fan_in), 1/sqrt(fan_in)))
# --------------------------------------------------------------------------
def init_params(key, input_size, hidden_dim, n_layers, output_size):
    params = {"rnn": []}
    bound = 1.0 / jnp.sqrt(hidden_dim)
    for l in range(n_layers):
        in_l = input_size if l == 0 else hidden_dim
        key, k1, k2, k3, k4 = jax.random.split(key, 5)
        w_ih = jax.random.uniform(k1, (hidden_dim, in_l), jnp.float32, -bound, bound)
        w_hh = jax.random.uniform(k2, (hidden_dim, hidden_dim), jnp.float32, -bound, bound)
        b_ih = jax.random.uniform(k3, (hidden_dim,), jnp.float32, -bound, bound)
        b_hh = jax.random.uniform(k4, (hidden_dim,), jnp.float32, -bound, bound)
        params["rnn"].append((w_ih, w_hh, b_ih, b_hh))

    fc1_in = hidden_dim * 4
    b1 = 1.0 / jnp.sqrt(fc1_in)
    key, k1, k2 = jax.random.split(key, 3)
    params["fc1_w"] = jax.random.uniform(k1, (75, fc1_in), jnp.float32, -b1, b1)
    params["fc1_b"] = jax.random.uniform(k2, (75,), jnp.float32, -b1, b1)

    b2 = 1.0 / jnp.sqrt(75.0)
    key, k1, k2 = jax.random.split(key, 3)
    params["fc2_w"] = jax.random.uniform(k1, (output_size, 75), jnp.float32, -b2, b2)
    params["fc2_b"] = jax.random.uniform(k2, (output_size,), jnp.float32, -b2, b2)
    return params


def _reference_forward(x, params, n_layers):
    """Pure-JAX reference (mirrors the PyTorch module) for correctness check."""
    B, T, _ = x.shape
    layer_in = x
    for l in range(n_layers):
        w_ih, w_hh, b_ih, b_hh = params["rnn"][l]
        h = jnp.zeros((B, w_hh.shape[0]), jnp.float32)
        outs = []
        for t in range(T):
            h = jnp.tanh(layer_in[:, t, :] @ w_ih.T + b_ih + h @ w_hh.T + b_hh)
            outs.append(h)
        layer_in = jnp.stack(outs, axis=1)
    flat = layer_in.reshape(B, -1)
    h1 = flat @ params["fc1_w"].T + params["fc1_b"]
    return h1 @ params["fc2_w"].T + params["fc2_b"]


if __name__ == "__main__":
    # seq_len must be 4 because fc1 expects hidden_dim * 4 input features.
    batch = 2
    seq_len = 4
    input_size = 16
    hidden_dim = 32
    n_layers = 2
    output_size = 5

    key = jax.random.PRNGKey(0)
    key, kx = jax.random.split(key)
    x = jax.random.normal(kx, (batch, seq_len, input_size), jnp.float32)

    params = init_params(key, input_size, hidden_dim, n_layers, output_size)

    # Pack (and pre-transpose / bias-fold) parameters once, outside the kernel.
    slab, layout, fc1_out = pack_params(
        params, input_size=input_size, hidden_dim=hidden_dim,
        n_layers=n_layers, seq_len=seq_len, output_size=output_size)

    out = rnn_model_forward(x, slab, layout, fc1_out,
                            n_layers=n_layers, hidden_dim=hidden_dim,
                            output_size=output_size)
    out = jax.block_until_ready(out)

    ref = _reference_forward(x, params, n_layers)
    assert out.shape == (batch, output_size)
    assert jnp.allclose(out, ref, atol=1e-5, rtol=1e-5), "mismatch vs reference"

    print("KERNEL_OK")
</pallas_src>

<mosaic_0001>
module attributes {stable_mosaic.version = 11 : i64} {
  func.func @_rnn_model_kernel(%arg0: memref<8x16xf32, #tpu.memory_space<vmem>>, %arg1: memref<352x128xf32, #tpu.memory_space<vmem>>, %arg2: memref<2x5xf32, #tpu.memory_space<vmem>>) attributes {dimension_semantics = [], scalar_prefetch = 0 : i64, scratch_operands = 0 : i64, tpu.core_type = #tpu.core_type<tc>} {
    %c0 = arith.constant 0 : index
    %c0_0 = arith.constant 0 : index
    %0 = vector.load %arg0[%c0, %c0_0] : memref<8x16xf32, #tpu.memory_space<vmem>>, vector<8x16xf32>
    %c0_1 = arith.constant 0 : index
    %c0_2 = arith.constant 0 : index
    %1 = vector.load %arg1[%c0_1, %c0_2] : memref<352x128xf32, #tpu.memory_space<vmem>>, vector<16x32xf32>
    %c16 = arith.constant 16 : index
    %c0_3 = arith.constant 0 : index
    %2 = vector.load %arg1[%c16, %c0_3] : memref<352x128xf32, #tpu.memory_space<vmem>>, vector<32x32xf32>
    %c48 = arith.constant 48 : index
    %c0_4 = arith.constant 0 : index
    %3 = vector.load %arg1[%c48, %c0_4] : memref<352x128xf32, #tpu.memory_space<vmem>>, vector<1x32xf32>
    %cst = arith.constant dense<0.000000e+00> : vector<8x32xf32>
    %4 = tpu.matmul %0, %1, %cst {dimension_numbers = #tpu.dot_dimension_numbers<[1], [0], [0], [1], [0, 0, 1, 1], [], []>} : vector<8x16xf32>, vector<16x32xf32>, vector<8x32xf32> -> vector<8x32xf32>
    %5 = vector.broadcast %3 : vector<1x32xf32> to vector<8x32xf32>
    %6 = arith.addf %4, %5 : vector<8x32xf32>
    %cst_5 = arith.constant 0.000000e+00 : f32
    %7 = vector.broadcast %cst_5 : f32 to vector<2x32xf32>
    %8 = vector.extract_strided_slice %6 {offsets = [0, 0], sizes = [2, 32], strides = [1, 1]} : vector<8x32xf32> to vector<2x32xf32>
    %cst_6 = arith.constant dense<0.000000e+00> : vector<2x32xf32>
    %9 = tpu.matmul %7, %2, %cst_6 {dimension_numbers = #tpu.dot_dimension_numbers<[1], [0], [0], [1], [0, 0, 1, 1], [], []>} : vector<2x32xf32>, vector<32x32xf32>, vector<2x32xf32> -> vector<2x32xf32>
    %10 = arith.addf %8, %9 : vector<2x32xf32>
    %11 = math.tanh %10 : vector<2x32xf32>
    %12 = vector.extract_strided_slice %6 {offsets = [2, 0], sizes = [2, 32], strides = [1, 1]} : vector<8x32xf32> to vector<2x32xf32>
    %cst_7 = arith.constant dense<0.000000e+00> : vector<2x32xf32>
    %13 = tpu.matmul %11, %2, %cst_7 {dimension_numbers = #tpu.dot_dimension_numbers<[1], [0], [0], [1], [0, 0, 1, 1], [], []>} : vector<2x32xf32>, vector<32x32xf32>, vector<2x32xf32> -> vector<2x32xf32>
    %14 = arith.addf %12, %13 : vector<2x32xf32>
    %15 = math.tanh %14 : vector<2x32xf32>
    %16 = vector.extract_strided_slice %6 {offsets = [4, 0], sizes = [2, 32], strides = [1, 1]} : vector<8x32xf32> to vector<2x32xf32>
    %cst_8 = arith.constant dense<0.000000e+00> : vector<2x32xf32>
    %17 = tpu.matmul %15, %2, %cst_8 {dimension_numbers = #tpu.dot_dimension_numbers<[1], [0], [0], [1], [0, 0, 1, 1], [], []>} : vector<2x32xf32>, vector<32x32xf32>, vector<2x32xf32> -> vector<2x32xf32>
    %18 = arith.addf %16, %17 : vector<2x32xf32>
    %19 = math.tanh %18 : vector<2x32xf32>
    %20 = vector.extract_strided_slice %6 {offsets = [6, 0], sizes = [2, 32], strides = [1, 1]} : vector<8x32xf32> to vector<2x32xf32>
    %cst_9 = arith.constant dense<0.000000e+00> : vector<2x32xf32>
    %21 = tpu.matmul %19, %2, %cst_9 {dimension_numbers = #tpu.dot_dimension_numbers<[1], [0], [0], [1], [0, 0, 1, 1], [], []>} : vector<2x32xf32>, vector<32x32xf32>, vector<2x32xf32> -> vector<2x32xf32>
    %22 = arith.addf %20, %21 : vector<2x32xf32>
    %23 = math.tanh %22 : vector<2x32xf32>
    %24 = tpu.concatenate %11, %15, %19, %23 in 0 : vector<2x32xf32>, vector<2x32xf32>, vector<2x32xf32>, vector<2x32xf32> -> vector<8x32xf32>
    %c56 = arith.constant 56 : index
    %c0_10 = arith.constant 0 : index
    %25 = vector.load %arg1[%c56, %c0_10] : memref<352x128xf32, #tpu.memory_space<vmem>>, vector<32x32xf32>
    %c88 = arith.constant 88 : index
    %c0_11 = arith.constant 0 : index
    %26 = vector.load %arg1[%c88, %c0_11] : memref<352x128xf32, #tpu.memory_space<vmem>>, vector<32x32xf32>
    %c120 = arith.constant 120 : index
    %c0_12 = arith.constant 0 : index
    %27 = vector.load %arg1[%c120, %c0_12] : memref<352x128xf32, #tpu.memory_space<vmem>>, vector<1x32xf32>
    %cst_13 = arith.constant dense<0.000000e+00> : vector<8x32xf32>
    %28 = tpu.matmul %24, %25, %cst_13 {dimension_numbers = #tpu.dot_dimension_numbers<[1], [0], [0], [1], [0, 0, 1, 1], [], []>} : vector<8x32xf32>, vector<32x32xf32>, vector<8x32xf32> -> vector<8x32xf32>
    %29 = vector.broadcast %27 : vector<1x32xf32> to vector<8x32xf32>
    %30 = arith.addf %28, %29 : vector<8x32xf32>
    %cst_14 = arith.constant 0.000000e+00 : f32
    %31 = vector.broadcast %cst_14 : f32 to vector<2x32xf32>
    %cst_15 = arith.constant 0.000000e+00 : f32
    %32 = vector.broadcast %cst_15 : f32 to vector<2x75xf32>
    %33 = vector.extract_strided_slice %30 {offsets = [0, 0], sizes = [2, 32], strides = [1, 1]} : vector<8x32xf32> to vector<2x32xf32>
    %cst_16 = arith.constant dense<0.000000e+00> : vector<2x32xf32>
    %34 = tpu.matmul %31, %26, %cst_16 {dimension_numbers = #tpu.dot_dimension_numbers<[1], [0], [0], [1], [0, 0, 1, 1], [], []>} : vector<2x32xf32>, vector<32x32xf32>, vector<2x32xf32> -> vector<2x32xf32>
    %35 = arith.addf %33, %34 : vector<2x32xf32>
    %36 = math.tanh %35 : vector<2x32xf32>
    %c128 = arith.constant 128 : index
    %c0_17 = arith.constant 0 : index
    %37 = vector.load %arg1[%c128, %c0_17] : memref<352x128xf32, #tpu.memory_space<vmem>>, vector<32x75xf32>
    %cst_18 = arith.constant dense<0.000000e+00> : vector<2x75xf32>
    %38 = tpu.matmul %36, %37, %cst_18 {dimension_numbers = #tpu.dot_dimension_numbers<[1], [0], [0], [1], [0, 0, 1, 1], [], []>} : vector<2x32xf32>, vector<32x75xf32>, vector<2x75xf32> -> vector<2x75xf32>
    %39 = arith.addf %32, %38 : vector<2x75xf32>
    %40 = vector.extract_strided_slice %30 {offsets = [2, 0], sizes = [2, 32], strides = [1, 1]} : vector<8x32xf32> to vector<2x32xf32>
    %cst_19 = arith.constant dense<0.000000e+00> : vector<2x32xf32>
    %41 = tpu.matmul %36, %26, %cst_19 {dimension_numbers = #tpu.dot_dimension_numbers<[1], [0], [0], [1], [0, 0, 1, 1], [], []>} : vector<2x32xf32>, vector<32x32xf32>, vector<2x32xf32> -> vector<2x32xf32>
    %42 = arith.addf %40, %41 : vector<2x32xf32>
    %43 = math.tanh %42 : vector<2x32xf32>
    %c160 = arith.constant 160 : index
    %c0_20 = arith.constant 0 : index
    %44 = vector.load %arg1[%c160, %c0_20] : memref<352x128xf32, #tpu.memory_space<vmem>>, vector<32x75xf32>
    %cst_21 = arith.constant dense<0.000000e+00> : vector<2x75xf32>
    %45 = tpu.matmul %43, %44, %cst_21 {dimension_numbers = #tpu.dot_dimension_numbers<[1], [0], [0], [1], [0, 0, 1, 1], [], []>} : vector<2x32xf32>, vector<32x75xf32>, vector<2x75xf32> -> vector<2x75xf32>
    %46 = arith.addf %39, %45 : vector<2x75xf32>
    %47 = vector.extract_strided_slice %30 {offsets = [4, 0], sizes = [2, 32], strides = [1, 1]} : vector<8x32xf32> to vector<2x32xf32>
    %cst_22 = arith.constant dense<0.000000e+00> : vector<2x32xf32>
    %48 = tpu.matmul %43, %26, %cst_22 {dimension_numbers = #tpu.dot_dimension_numbers<[1], [0], [0], [1], [0, 0, 1, 1], [], []>} : vector<2x32xf32>, vector<32x32xf32>, vector<2x32xf32> -> vector<2x32xf32>
    %49 = arith.addf %47, %48 : vector<2x32xf32>
    %50 = math.tanh %49 : vector<2x32xf32>
    %c192 = arith.constant 192 : index
    %c0_23 = arith.constant 0 : index
    %51 = vector.load %arg1[%c192, %c0_23] : memref<352x128xf32, #tpu.memory_space<vmem>>, vector<32x75xf32>
    %cst_24 = arith.constant dense<0.000000e+00> : vector<2x75xf32>
    %52 = tpu.matmul %50, %51, %cst_24 {dimension_numbers = #tpu.dot_dimension_numbers<[1], [0], [0], [1], [0, 0, 1, 1], [], []>} : vector<2x32xf32>, vector<32x75xf32>, vector<2x75xf32> -> vector<2x75xf32>
    %53 = arith.addf %46, %52 : vector<2x75xf32>
    %54 = vector.extract_strided_slice %30 {offsets = [6, 0], sizes = [2, 32], strides = [1, 1]} : vector<8x32xf32> to vector<2x32xf32>
    %cst_25 = arith.constant dense<0.000000e+00> : vector<2x32xf32>
    %55 = tpu.matmul %50, %26, %cst_25 {dimension_numbers = #tpu.dot_dimension_numbers<[1], [0], [0], [1], [0, 0, 1, 1], [], []>} : vector<2x32xf32>, vector<32x32xf32>, vector<2x32xf32> -> vector<2x32xf32>
    %56 = arith.addf %54, %55 : vector<2x32xf32>
    %57 = math.tanh %56 : vector<2x32xf32>
    %c224 = arith.constant 224 : index
    %c0_26 = arith.constant 0 : index
    %58 = vector.load %arg1[%c224, %c0_26] : memref<352x128xf32, #tpu.memory_space<vmem>>, vector<32x75xf32>
    %cst_27 = arith.constant dense<0.000000e+00> : vector<2x75xf32>
    %59 = tpu.matmul %57, %58, %cst_27 {dimension_numbers = #tpu.dot_dimension_numbers<[1], [0], [0], [1], [0, 0, 1, 1], [], []>} : vector<2x32xf32>, vector<32x75xf32>, vector<2x75xf32> -> vector<2x75xf32>
    %60 = arith.addf %53, %59 : vector<2x75xf32>
    %c256 = arith.constant 256 : index
    %c0_28 = arith.constant 0 : index
    %61 = vector.load %arg1[%c256, %c0_28] : memref<352x128xf32, #tpu.memory_space<vmem>>, vector<1x75xf32>
    %62 = vector.broadcast %61 : vector<1x75xf32> to vector<2x75xf32>
    %63 = arith.addf %60, %62 : vector<2x75xf32>
    %c264 = arith.constant 264 : index
    %c0_29 = arith.constant 0 : index
    %64 = vector.load %arg1[%c264, %c0_29] : memref<352x128xf32, #tpu.memory_space<vmem>>, vector<75x5xf32>
    %cst_30 = arith.constant dense<0.000000e+00> : vector<2x5xf32>
    %65 = tpu.matmul %63, %64, %cst_30 {dimension_numbers = #tpu.dot_dimension_numbers<[1], [0], [0], [1], [0, 0, 1, 1], [], []>} : vector<2x75xf32>, vector<75x5xf32>, vector<2x5xf32> -> vector<2x5xf32>
    %c344 = arith.constant 344 : index
    %c0_31 = arith.constant 0 : index
    %66 = vector.load %arg1[%c344, %c0_31] : memref<352x128xf32, #tpu.memory_space<vmem>>, vector<1x5xf32>
    %67 = vector.broadcast %66 : vector<1x5xf32> to vector<2x5xf32>
    %68 = arith.addf %65, %67 : vector<2x5xf32>
    %c0_32 = arith.constant 0 : index
    %c0_33 = arith.constant 0 : index
    %69 = vector.load %arg2[%c0_32, %c0_33] : memref<2x5xf32, #tpu.memory_space<vmem>>, vector<2x5xf32>
    tpu.vector_store %arg2[%c0_32, %c0_33], %68 {strides = array<i32>} : memref<2x5xf32, #tpu.memory_space<vmem>>, vector<2x5xf32>,
    return
  }
}

</mosaic_0001>

<bundles_post_ra>
// kernel: tpu_custom_call.1
= control target key start
LH: loop header
LB: loop body
LE: loop exit
PB: predicated region body
PF: predicated region fallthrough
CT: control target
= control target key end

     0   :  { %7 = vsyncpa [#allocation3], 0  ;;  %s1791_s0 = inlined_call_operand.hbm [shape: f32[8,16], index: 0, kind: input, shape index: {}]   ;;  %s1792_s1 = inlined_call_operand.hbm [shape: f32[352,128], index: 1, kind: input, shape index: {}]   ;;  %s1793_s2 = inlined_call_operand.hbm [shape: f32[2,5], index: 2, kind: output, shape index: {}]  }
   0x1   :  { %8 = vsyncpa [#allocation6], 0 }
   0x2   :  { %9 = vsyncpa [#allocation4], 0  ;;  %s1614_s9 = smov [#allocation2]   ;;  %s1615_s11 = smov [#allocation5]  }
   0x3   :  { %s16_s10 = sshll.u32 %s1614_s9, 4  ;;  %s25_s12 = sshll.u32 %s1615_s11, 4  ;;  %s17_s10 = int_to_ptr.vmem [resolvable:$true] %s16_s10  ;;  %s26_s12 = int_to_ptr.vmem [resolvable:$true] %s25_s12 }
   0x4   :  { %s1556_s13 = scalar_lea.vmem %s17_s10, 128  ;;  %p1561_p1 = scmp.lt.s32.totalorder %s17_s10, %s17_s10 }
   0x5   :  { %p1557_p0 = scmp.ne.s32.totalorder %s17_s10, %s1556_s13  ;;  %p1562_p2 = scmp.lt.s32.totalorder %s1556_s13, %s1556_s13 }
   0x7   :  { %p1563_p3 = por %p1562_p2, %p1561_p1 }
   0x9   :  { %p1564_p4 = pnand %p1563_p3, %p1557_p0 }
   0xb   :  { %1567 = shalt.err (!%p1564_p4)
}
   0xc   :  { %19 = dma.hbm_to_vmem [thread:$0]  %s1791_s0, 128, %s17_s10, [#allocation3]  }
   0xd   :  { %s1576_s16 = scalar_lea.vmem %s26_s12, 5632  ;;  %p1581_p6 = scmp.lt.s32.totalorder %s26_s12, %s26_s12 }
   0xe   :  { %p1577_p5 = scmp.ne.s32.totalorder %s26_s12, %s1576_s16  ;;  %p1582_p7 = scmp.lt.s32.totalorder %s1576_s16, %s1576_s16 }
  0x10   :  { %p1583_p8 = por %p1582_p7, %p1581_p6 }
  0x12   :  { %p1584_p9 = pnand %p1583_p8, %p1577_p5 }
  0x14   :  { %1587 = shalt.err (!%p1584_p9)
}
  0x15   :  { %s1616_s17 = smov 128   ;;  %s1617_s18 = smov 8  }
  0x16   :  { %31 = dma.hbm_to_vmem [thread:$0]  %s1792_s1, 5632, %s26_s12, [#allocation6], %s1616_s17, %s1616_s17, %s1617_s18  }
  0x17   :  { %1608 = dma.done.wait [#allocation3], 128  }
  0x18   :  { %1609 = vsyncadd [#allocation3], 4294967168 }
  0x19   :  { %1610 = dma.done.wait [#allocation6], 5632  }
  0x1a   :  { %1611 = vsyncadd [#allocation6], 4294961664  ;;  %v1618_v0 = vmov 0.0   ;;  %vm1619_vm0 = vmmov 0   ;;  %v40_v1 = vld [vmem:[#allocation5 + $0x8] sm:$0xff]  ;;  %v39_v3 = vld [vmem:[#allocation5] sm:$0xff] }
  0x1b   :  { %1352 = vmatprep.subr.mxu0 %v1618_v0  ;;  %1359 = vmatprep.subr.mxu1 %v1618_v0  ;;  %v44_v2 = vld [vmem:[#allocation5 + $0x28] sm:$0xff]  ;;  %v43_v4 = vld [vmem:[#allocation5 + $0x20] sm:$0xff]  ;;  %v38_v5 = vld [vmem:[#allocation2] sm:$0xff]  ;;  %vm50_vm1 = vcmask 130048   ;;  %vm124_vm2 = vcmask 261120   ;;  %vm436_vm3 = vcmask 1041408  }
  0x1c   :  { %1356 = vmatprep.mubr.msk.f32.mxu0 %vm1619_vm0, %v1618_v0  ;;  %1367 = vmatprep.mubr.msk.f32.mxu1 %vm1619_vm0, %v1618_v0  ;;  %v42_v6 = vld [vmem:[#allocation5 + $0x18] sm:$0xff]  ;;  %v41_v7 = vld [vmem:[#allocation5 + $0x10] sm:$0xff]  ;;  %vm438_vm4 = vcmask 1043456   ;;  %v444_v32 = vld [vmem:[#allocation5 + $0x48] sm:$0xff]  ;;  %vm440_vm5 = vcmask 1045504   ;;  %vm1163_vm6 = vcmask 1042432  }
  0x1d   :  { %1353 = vmatpush3.msra.mxu0 %v40_v1  ;;  %1360 = vmatpush3.msra.mxu1 %v44_v2  ;;  %v1255_v8 = vld [vmem:[#allocation5 + $0x30] ss:$0 sm:$0xff]  ;;  %v1688_v33 = vld [vmem:[#allocation5 + $0x68] sm:$0xff]  ;;  %v443_v34 = vld [vmem:[#allocation5 + $0x40] sm:$0xff]  ;;  %vm1159_vm7 = vcmask 613376   ;;  %s1620_s0 = smov [#allocation7]  }
  0x1e   :  { %1354 = vmatprep.subr.mxu0 %v1618_v0  ;;  %1361 = vmatprep.subr.mxu1 %v1618_v0  ;;  %v445_v30 = vld [vmem:[#allocation5 + $0x50] sm:$0xff]  ;;  %v1692_v35 = vld [vmem:[#allocation5 + $0x60] sm:$0xff]  ;;  %v442_v36 = vld [vmem:[#allocation5 + $0x38] sm:$0xff]  ;;  %s1245_s1 = sshll.u32 %s1620_s0, 4  ;;  %vm1237_vm8 = vcmask 33792   ;;  %s1246_s1 = int_to_ptr.vmem [resolvable:$true] %s1245_s1 }
  0x1f   :  { %1355 = vmatpush3.msra.mxu0 %v39_v3  ;;  %1362 = vmatpush3.msra.mxu1 %v43_v4  ;;  %v1685_v31 = vld [vmem:[#allocation5 + $0x70] sm:$0xff]  ;;  %v1697_v37 = vld [vmem:[#allocation5 + $0x58] sm:$0xff]  ;;  %v601_v54 = vld [vmem:[#allocation5 + $0x88] sm:$0xff]  ;;  %s1588_s21 = scalar_lea.vmem %s1246_s1, 32  ;;  %p1593_p11 = scmp.lt.s32.totalorder %s1246_s1, %s1246_s1 }
  0x20   :  { %1357 = vmatmul.mubr.msk.f32.vlgmr.msra.gmra.mxu0 %vm50_vm1, %v38_v5  ;;  %1363 = vmatprep.subr.mxu1 %v1618_v0  ;;  %v1260_v46 = vld [vmem:[#allocation5 + $0x78] ss:$0 sm:$0xff]  ;;  %v602_v53 = vld [vmem:[#allocation5 + $0x90] sm:$0xff]  ;;  %v600_v55 = vld [vmem:[#allocation5 + $0x80] sm:$0xff]  ;;  %p1589_p10 = scmp.ne.s32.totalorder %s1246_s1, %s1588_s21  ;;  %p1594_p12 = scmp.lt.s32.totalorder %s1588_s21, %s1588_s21 }
  0x21   :  { %1364 = vmatpush3.msra.mxu1 %v42_v6  ;;  %1392 = vmatprep.subr.mxu0 %v1618_v0  ;;  %v603_v51 = vld [vmem:[#allocation5 + $0x98] sm:$0xff]  ;;  %v684_v57 = vld [vmem:[#allocation5 + $0xb0] sm:$0xff]  ;;  %v683_v58 = vld [vmem:[#allocation5 + $0xa8] sm:$0xff] }
  0x22   :  { %1365 = vmatprep.subr.mxu1 %v1618_v0  ;;  %1393 = vmatpush3.msra.mxu0 %v44_v2  ;;  %v685_v56 = vld [vmem:[#allocation5 + $0xb8] sm:$0xff]  ;;  %v682_v59 = vld [vmem:[#allocation5 + $0xa0] sm:$0xff]  ;;  %p1595_p13 = por %p1594_p12, %p1593_p11 }
  0x23   :  { %1366 = vmatpush3.msra.mxu1 %v41_v7  ;;  %1394 = vmatprep.subr.mxu0 %v1618_v0  ;;  %v908_v5 = vld [vmem:[#allocation5 + $0xd8] sm:$0xff] }
  0x24   :  { %1368 = vmatmul.mubr.f32.vlgmr.msra.gmra.mxu1 %v1618_v0  ;;  %1370 = vmatprep.subr.mxu1 %v1618_v0  ;;  %p1596_p0 = pnand %p1595_p13, %p1589_p10 }
  0x25   :  { %1371 = vmatpush3.msra.mxu1 %v44_v2  ;;  %1378 = vmatprep.mubr.msk.f32.mxu1 %vm1619_vm0, %v1618_v0 }
  0x26   :  { %1372 = vmatprep.subr.mxu1 %v1618_v0  ;;  %1395 = vmatpush3.msra.mxu0 %v43_v4 }
  0x27   :  { %1373 = vmatpush3.msra.mxu1 %v43_v4  ;;  %1396 = vmatprep.subr.mxu0 %v1618_v0 }
  0x28   :  { %1374 = vmatprep.subr.mxu1 %v1618_v0  ;;  %1397 = vmatpush3.msra.mxu0 %v42_v6 }
  0x29   :  { %1375 = vmatpush3.msra.mxu1 %v42_v6  ;;  %1398 = vmatprep.subr.mxu0 %v1618_v0 }
  0x2a   :  { %1376 = vmatprep.subr.mxu1 %v1618_v0  ;;  %1399 = vmatpush3.msra.mxu0 %v41_v7 }
  0x2b   :  { %1377 = vmatpush3.msra.mxu1 %v41_v7  ;;  %1400 = vmatprep.mubr.msk.f32.mxu0 %vm1619_vm0, %v1618_v0 }
  0x2c   :  { %1381 = vmatprep.subr.mxu1 %v1618_v0  ;;  %1414 = vmatprep.subr.mxu0 %v1618_v0 }
  0xe0   :  { %v120_v9 = vpop.f32.mrf.mxu0 }
  0xe1   :  { %v1667_v10 = vadd.f32 %v1255_v8, %v120_v9  ;;  %v905_v8 = vld [vmem:[#allocation5 + $0xc0] sm:$0xff] }
  0xe2   :  { %v1358_v11 = vpop.f32.mrf.mxu0 }
  0xe4   :  { %v194_v12 = vpop.f32.mrf.mxu1 }
  0xe5   :  { %v198_v13 = vadd.f32 %v194_v12, %v1667_v10 }
  0xe6   :  { %v1369_v14 = vpop.f32.mrf.mxu1 }
  0xe7   :  { %1532 = vtanh.f32 %v198_v13 }
  0xf4   :  { %v1533_v15 = vpop.eup %1532 }
  0xf5   :  { %1379 = vmatmul.mubr.msk.f32.vlgmr.msra.gmra.mxu1 %vm124_vm2, %v1533_v15 }
  0xf6   :  { %1382 = vmatpush3.msra.mxu1 %v44_v2  ;;  %1389 = vmatprep.mubr.msk.f32.mxu1 %vm1619_vm0, %v1618_v0 }
  0xf7   :  { %1383 = vmatprep.subr.mxu1 %v1618_v0 }
  0xf8   :  { %1384 = vmatpush3.msra.mxu1 %v43_v4 }
  0xf9   :  { %1385 = vmatprep.subr.mxu1 %v1618_v0 }
  0xfa   :  { %1386 = vmatpush3.msra.mxu1 %v42_v6  ;;  %v907_v6 = vld [vmem:[#allocation5 + $0xd0] sm:$0xff] }
  0xfb   :  { %1387 = vmatprep.subr.mxu1 %v1618_v0 }
  0xfc   :  { %1388 = vmatpush3.msra.mxu1 %v41_v7  ;;  %v906_v7 = vld [vmem:[#allocation5 + $0xc8] sm:$0xff] }
  0xfd   :  { %1403 = vmatprep.subr.mxu1 %v1618_v0 }
 0x1b5   :  { %v269_v16 = vpop.f32.mrf.mxu1 }
 0x1b6   :  { %v274_v17 = vrot.slane %v269_v16, 6 }
 0x1b7   :  { %v1380_v18 = vpop.f32.mrf.mxu1 }
 0x1b8   :  { %v276_v19 = vadd.f32 %v274_v17, %v1667_v10  ;;  %v1062_v17 = vld [vmem:[#allocation5 + $0xf8] sm:$0xff]  ;;  %v1061_v18 = vld [vmem:[#allocation5 + $0xf0] sm:$0xff] }
 0x1ba   :  { %1534 = vtanh.f32 %v276_v19  ;;  %v1060_v19 = vld [vmem:[#allocation5 + $0xe8] sm:$0xff] }
 0x1c7   :  { %v1535_v20 = vpop.eup %1534 }
 0x1c8   :  { %v279_v21 = vrot.slane %v1535_v20, 2  ;;  %v437_v27 = vsel %vm436_vm3, %v1533_v15, %v1535_v20  ;;  %v1059_v20 = vld [vmem:[#allocation5 + $0xe0] sm:$0xff] }
 0x1ca   :  { %1390 = vmatmul.mubr.msk.f32.vlgmr.msra.gmra.mxu1 %vm124_vm2, %v279_v21  ;;  %v1153_v21 = vld [vmem:[#allocation5 + $0x150] sm:$0x7] }
 0x1cb   :  { %1411 = vmatprep.mubr.msk.f32.mxu1 %vm1619_vm0, %v1618_v0  ;;  %1404 = vmatpush3.msra.mxu1 %v445_v30 }
 0x1cc   :  { %1405 = vmatprep.subr.mxu1 %v1618_v0 }
 0x1cd   :  { %1406 = vmatpush3.msra.mxu1 %v444_v32 }
 0x1ce   :  { %1407 = vmatprep.subr.mxu1 %v1618_v0 }
 0x1cf   :  { %1408 = vmatpush3.msra.mxu1 %v443_v34 }
 0x1d0   :  { %1409 = vmatprep.subr.mxu1 %v1618_v0 }
 0x1d1   :  { %1410 = vmatpush3.msra.mxu1 %v442_v36 }
 0x1d2   :  { %1425 = vmatprep.subr.mxu1 %v1618_v0 }
 0x28a   :  { %v348_v22 = vpop.f32.mrf.mxu1 }
 0x28b   :  { %v353_v23 = vrot.slane %v348_v22, 4  ;;  %v1152_v22 = vld [vmem:[#allocation5 + $0x148] sm:$0xff] }
 0x28c   :  { %v1391_v24 = vpop.f32.mrf.mxu1 }
 0x28d   :  { %v355_v25 = vadd.f32 %v353_v23, %v1667_v10  ;;  %v1151_v23 = vld [vmem:[#allocation5 + $0x140] sm:$0xff]  ;;  %v1150_v24 = vld [vmem:[#allocation5 + $0x138] sm:$0xff] }
 0x28f   :  { %1536 = vtanh.f32 %v355_v25  ;;  %v1149_v25 = vld [vmem:[#allocation5 + $0x130] sm:$0xff] }
 0x29c   :  { %v1537_v26 = vpop.eup %1536 }
 0x29d   :  { %v358_v28 = vrot.slane %v1537_v26, 4  ;;  %v439_v29 = vsel %vm438_vm4, %v437_v27, %v1537_v26  ;;  %v1148_v26 = vld [vmem:[#allocation5 + $0x128] sm:$0xff]  ;;  %v1147_v27 = vld [vmem:[#allocation5 + $0x120] sm:$0xff] }
 0x29f   :  { %1401 = vmatmul.mubr.msk.f32.vlgmr.msra.gmra.mxu0 %vm124_vm2, %v358_v28 }
 0x2a0   :  { %1422 = vmatprep.mubr.msk.f32.mxu0 %vm1619_vm0, %v1618_v0  ;;  %1415 = vmatpush3.msra.mxu0 %v1685_v31 }
 0x2a1   :  { %1416 = vmatprep.subr.mxu0 %v1618_v0 }
 0x2a2   :  { %1417 = vmatpush3.msra.mxu0 %v1688_v33 }
 0x2a3   :  { %1418 = vmatprep.subr.mxu0 %v1618_v0 }
 0x2a4   :  { %1419 = vmatpush3.msra.mxu0 %v1692_v35 }
 0x2a5   :  { %1420 = vmatprep.subr.mxu0 %v1618_v0 }
 0x2a6   :  { %1421 = vmatpush3.msra.mxu0 %v1697_v37 }
 0x2a7   :  { %1423 = vmatmul.mubr.f32.vlgmr.msra.gmra.mxu0 %v1618_v0  ;;  %1436 = vmatprep.subr.mxu0 %v1618_v0 }
 0x2a8   :  { %1444 = vmatprep.mubr.msk.f32.mxu0 %vm1619_vm0, %v1618_v0  ;;  %1437 = vmatpush3.msra.mxu0 %v685_v56 }
 0x2a9   :  { %1438 = vmatprep.subr.mxu0 %v1618_v0 }
 0x2aa   :  { %1439 = vmatpush3.msra.mxu0 %v684_v57 }
 0x2ab   :  { %1440 = vmatprep.subr.mxu0 %v1618_v0 }
 0x2ac   :  { %1441 = vmatpush3.msra.mxu0 %v683_v58 }
 0x2ad   :  { %1442 = vmatprep.subr.mxu0 %v1618_v0 }
 0x2ae   :  { %1443 = vmatpush3.msra.mxu0 %v682_v59 }
 0x2af   :  { %1458 = vmatprep.subr.mxu0 %v1618_v0 }
 0x35f   :  { %v427_v38 = vpop.f32.mrf.mxu0 }
 0x360   :  { %v432_v39 = vrot.slane %v427_v38, 2  ;;  %v1146_v38 = vld [vmem:[#allocation5 + $0x118] sm:$0xff] }
 0x361   :  { %v1402_v40 = vpop.f32.mrf.mxu0 }
 0x362   :  { %v434_v41 = vadd.f32 %v432_v39, %v1667_v10  ;;  %v1145_v39 = vld [vmem:[#allocation5 + $0x110] sm:$0xff]  ;;  %v1144_v40 = vld [vmem:[#allocation5 + $0x108] sm:$0xff] }
 0x364   :  { %1538 = vtanh.f32 %v434_v41 }
 0x367   :  { %v594_v44 = vpop.f32.mrf.mxu0 }
 0x369   :  { %v1424_v45 = vpop.f32.mrf.mxu0 }
 0x371   :  { %v1539_v42 = vpop.eup %1538 }
 0x372   :  { %v441_v43 = vsel %vm440_vm5, %v439_v29, %v1539_v42  ;;  %v1269_v42 = vld [vmem:[#allocation5 + $0x100] ss:$0 sm:$0xff] }
 0x373   :  { %1412 = vmatmul.mubr.msk.f32.vlgmr.msra.gmra.mxu1 %vm124_vm2, %v441_v43 }
 0x374   :  { %1426 = vmatpush3.msra.mxu1 %v1685_v31  ;;  %1433 = vmatprep.mubr.msk.f32.mxu1 %vm1619_vm0, %v1618_v0 }
 0x375   :  { %1427 = vmatprep.subr.mxu1 %v1618_v0 }
 0x376   :  { %1428 = vmatpush3.msra.mxu1 %v1688_v33 }
 0x377   :  { %1429 = vmatprep.subr.mxu1 %v1618_v0 }
 0x378   :  { %1430 = vmatpush3.msra.mxu1 %v1692_v35 }
 0x379   :  { %1431 = vmatprep.subr.mxu1 %v1618_v0 }
 0x37a   :  { %1432 = vmatpush3.msra.mxu1 %v1697_v37 }
 0x37b   :  { %1447 = vmatprep.subr.mxu1 %v1618_v0 }
 0x433   :  { %v524_v47 = vpop.f32.mrf.mxu1 }
 0x434   :  { %v1720_v48 = vadd.f32 %v1260_v46, %v524_v47  ;;  %v1270_v46 = vld [vmem:[#allocation5 + $0x158] ss:$0 sm:$0xff] }
 0x435   :  { %v1413_v49 = vpop.f32.mrf.mxu1 }
 0x436   :  { %v598_v50 = vadd.f32 %v594_v44, %v1720_v48 }
 0x438   :  { %1540 = vtanh.f32 %v598_v50 }
 0x445   :  { %v1541_v52 = vpop.eup %1540 }
 0x446   :  { %1434 = vmatmul.mubr.msk.f32.vlgmr.msra.gmra.mxu1 %vm124_vm2, %v1541_v52 }
 0x447   :  { %1448 = vmatpush3.msra.mxu1 %v603_v51  ;;  %1455 = vmatprep.mubr.msk.f32.mxu1 %vm1619_vm0, %v1618_v0 }
 0x448   :  { %1449 = vmatprep.subr.mxu1 %v1618_v0 }
 0x449   :  { %1450 = vmatpush3.msra.mxu1 %v602_v53 }
 0x44a   :  { %1451 = vmatprep.subr.mxu1 %v1618_v0 }
 0x44b   :  { %1452 = vmatpush3.msra.mxu1 %v601_v54 }
 0x44c   :  { %1453 = vmatprep.subr.mxu1 %v1618_v0 }
 0x44d   :  { %1454 = vmatpush3.msra.mxu1 %v600_v55 }
 0x44e   :  { %1456 = vmatmul.mubr.msk.f32.vlgmr.msra.gmra.mxu1 %vm124_vm2, %v1541_v52  ;;  %1469 = vmatprep.subr.mxu1 %v1618_v0 }
 0x44f   :  { %1477 = vmatprep.mubr.msk.f32.mxu1 %vm1619_vm0, %v1618_v0  ;;  %1470 = vmatpush3.msra.mxu1 %v908_v5 }
 0x450   :  { %1471 = vmatprep.subr.mxu1 %v1618_v0 }
 0x451   :  { %1472 = vmatpush3.msra.mxu1 %v907_v6 }
 0x452   :  { %1473 = vmatprep.subr.mxu1 %v1618_v0 }
 0x453   :  { %1474 = vmatpush3.msra.mxu1 %v906_v7 }
 0x454   :  { %1475 = vmatprep.subr.mxu1 %v1618_v0 }
 0x455   :  { %1476 = vmatpush3.msra.mxu1 %v905_v8 }
 0x456   :  { %1491 = vmatprep.subr.mxu1 %v1618_v0 }
 0x506   :  { %v673_v60 = vpop.f32.mrf.mxu1 }
 0x507   :  { %v678_v61 = vrot.slane %v673_v60, 6 }
 0x508   :  { %v1435_v62 = vpop.f32.mrf.mxu1 }
 0x509   :  { %v680_v63 = vadd.f32 %v678_v61, %v1720_v48 }
 0x50b   :  { %1542 = vtanh.f32 %v680_v63 }
 0x50e   :  { %v1738_v1 = vpop.f32.mrf.mxu1 }
 0x510   :  { %v1457_v2 = vpop.f32.mrf.mxu1 }
 0x518   :  { %v1543_v3 = vpop.eup %1542 }
 0x519   :  { %v687_v4 = vrot.slane %v1543_v3, 2 }
 0x51b   :  { %1445 = vmatmul.mubr.msk.f32.vlgmr.msra.gmra.mxu0 %vm124_vm2, %v687_v4 }
 0x51c   :  { %1459 = vmatpush3.msra.mxu0 %v1685_v31  ;;  %1466 = vmatprep.mubr.msk.f32.mxu0 %vm1619_vm0, %v1618_v0 }
 0x51d   :  { %1460 = vmatprep.subr.mxu0 %v1618_v0 }
 0x51e   :  { %1461 = vmatpush3.msra.mxu0 %v1688_v33 }
 0x51f   :  { %1462 = vmatprep.subr.mxu0 %v1618_v0 }
 0x520   :  { %1463 = vmatpush3.msra.mxu0 %v1692_v35 }
 0x521   :  { %1464 = vmatprep.subr.mxu0 %v1618_v0 }
 0x522   :  { %1465 = vmatpush3.msra.mxu0 %v1697_v37 }
 0x523   :  { %1467 = vmatmul.mubr.msk.f32.vlgmr.msra.gmra.mxu0 %vm124_vm2, %v687_v4  ;;  %1480 = vmatprep.subr.mxu0 %v1618_v0 }
 0x524   :  { %1481 = vmatpush3.msra.mxu0 %v1685_v31  ;;  %1488 = vmatprep.mubr.msk.f32.mxu0 %vm1619_vm0, %v1618_v0 }
 0x525   :  { %1482 = vmatprep.subr.mxu0 %v1618_v0 }
 0x526   :  { %1483 = vmatpush3.msra.mxu0 %v1688_v33 }
 0x527   :  { %1484 = vmatprep.subr.mxu0 %v1618_v0 }
 0x528   :  { %1485 = vmatpush3.msra.mxu0 %v1692_v35 }
 0x529   :  { %1486 = vmatprep.subr.mxu0 %v1618_v0 }
 0x52a   :  { %1487 = vmatpush3.msra.mxu0 %v1697_v37 }
 0x52b   :  { %1502 = vmatprep.subr.mxu0 %v1618_v0 }
 0x5db   :  { %v756_v9 = vpop.f32.mrf.mxu0 }
 0x5dc   :  { %v827_v28 = vadd.f32 %v1738_v1, %v756_v9 }
 0x5dd   :  { %v1446_v10 = vpop.f32.mrf.mxu0 }
 0x5e3   :  { %v896_v11 = vpop.f32.mrf.mxu0 }
 0x5e4   :  { %v901_v12 = vrot.slane %v896_v11, 4 }
 0x5e5   :  { %v1468_v13 = vpop.f32.mrf.mxu0 }
 0x5e6   :  { %v903_v14 = vadd.f32 %v901_v12, %v1720_v48 }
 0x5e8   :  { %1544 = vtanh.f32 %v903_v14 }
 0x5f5   :  { %v1545_v15 = vpop.eup %1544 }
 0x5f6   :  { %v910_v16 = vrot.slane %v1545_v15, 4 }
 0x5f8   :  { %1478 = vmatmul.mubr.msk.f32.vlgmr.msra.gmra.mxu1 %vm124_vm2, %v910_v16  ;;  %1489 = vmatmul.mubr.msk.f32.vlgmr.msra.gmra.mxu0 %vm124_vm2, %v910_v16 }
 0x5f9   :  { %1499 = vmatprep.mubr.msk.f32.mxu1 %vm1619_vm0, %v1618_v0  ;;  %1522 = vmatprep.mubr.msk.f32.mxu0 %vm1619_vm0, %v1618_v0 }
 0x5fa   :  { %1492 = vmatpush3.msra.mxu1 %v1062_v17  ;;  %1503 = vmatpush3.msk.msra.mxu0 %vm1163_vm6, %v1153_v21 }
 0x5fb   :  { %1493 = vmatprep.subr.mxu1 %v1618_v0  ;;  %1504 = vmatprep.subr.mxu0 %v1618_v0 }
 0x5fc   :  { %1494 = vmatpush3.msra.mxu1 %v1061_v18  ;;  %1505 = vmatpush3.msra.mxu0 %v1152_v22 }
 0x5fd   :  { %1495 = vmatprep.subr.mxu1 %v1618_v0  ;;  %1506 = vmatprep.subr.mxu0 %v1618_v0 }
 0x5fe   :  { %1496 = vmatpush3.msra.mxu1 %v1060_v19  ;;  %1507 = vmatpush3.msra.mxu0 %v1151_v23 }
 0x5ff   :  { %1497 = vmatprep.subr.mxu1 %v1618_v0  ;;  %1508 = vmatprep.subr.mxu0 %v1618_v0 }
 0x600   :  { %1498 = vmatpush3.msra.mxu1 %v1059_v20  ;;  %1509 = vmatpush3.msra.mxu0 %v1150_v24 }
 0x601   :  { %1510 = vmatprep.subr.mxu0 %v1618_v0 }
 0x602   :  { %1511 = vmatpush3.msra.mxu0 %v1149_v25 }
 0x603   :  { %1512 = vmatprep.subr.mxu0 %v1618_v0 }
 0x604   :  { %1513 = vmatpush3.msra.mxu0 %v1148_v26 }
 0x605   :  { %1514 = vmatprep.subr.mxu0 %v1618_v0 }
 0x606   :  { %1515 = vmatpush3.msra.mxu0 %v1147_v27 }
 0x607   :  { %1516 = vmatprep.subr.mxu0 %v1618_v0 }
 0x608   :  { %1517 = vmatpush3.msra.mxu0 %v1146_v38 }
 0x609   :  { %1518 = vmatprep.subr.mxu0 %v1618_v0 }
 0x60a   :  { %1519 = vmatpush3.msra.mxu0 %v1145_v39 }
 0x60b   :  { %1520 = vmatprep.subr.mxu0 %v1618_v0 }
 0x60c   :  { %1521 = vmatpush3.msra.mxu0 %v1144_v40 }
 0x6b8   :  { %v979_v29 = vpop.f32.mrf.mxu1  ;;  %v1050_v30 = vpop.f32.mrf.mxu0 }
 0x6b9   :  { %v983_v31 = vadd.f32 %v979_v29, %v827_v28  ;;  %v1055_v32 = vrot.slane %v1050_v30, 2 }
 0x6ba   :  { %v1479_v33 = vpop.f32.mrf.mxu1  ;;  %v1490_v34 = vpop.f32.mrf.mxu0 }
 0x6bb   :  { %v1057_v35 = vadd.f32 %v1055_v32, %v1720_v48 }
 0x6bd   :  { %1546 = vtanh.f32 %v1057_v35 }
 0x6ca   :  { %v1547_v36 = vpop.eup %1546 }
 0x6cb   :  { %v1064_v37 = vrot.slane %v1547_v36, 6 }
 0x6cd   :  { %1500 = vmatmul.mubr.msk.f32.vlgmr.msra.gmra.mxu1 %vm124_vm2, %v1064_v37 }
 0x78d   :  { %v1133_v41 = vpop.f32.mrf.mxu1 }
 0x78e   :  { %v1137_v43 = vadd.f32 %v1133_v41, %v983_v31 }
 0x78f   :  { %v1501_v44 = vpop.f32.mrf.mxu1 }
 0x790   :  { %v1143_v45 = vadd.f32 %v1269_v42, %v1137_v43 }
 0x792   :  { %1523 = vmatmul.mubr.msk.f32.vlgmr.msra.gmra.mxu0 %vm1159_vm7, %v1143_v45 }
 0x852   :  { %v1233_v47 = vpop.f32.mrf.mxu0 }
 0x853   :  { %v1234_v48 = vadd.f32 %v1270_v46, %v1233_v47 }
 0x854   :  { %v1524_v49 = vpop.f32.mrf.mxu0 }
 0x855   :  { %1238 = vst.msk [vmem:[#allocation7] sm:$0x3] %vm1237_vm8, %v1234_v48 }
 0x856   :  { %1599 = shalt.err (!%p1596_p0)
}
 0x857   :  { %1248 = dma.vmem_to_hbm [thread:$0]  %s1246_s1, 32, %s1793_s2, [#allocation4]  }
 0x858   :  { %1612 = dma.done.wait [#allocation4], 32  }
 0x859   :  { %1613 = vsyncadd [#allocation4], 4294967264 }
 0x85a   :  { %1252 = vsyncpa [#allocation3], 1 }
 0x85b   :  { %1253 = vsyncpa [#allocation6], 1 }
 0x85c   :  { %1254 = vsyncpa [#allocation4], 1 }

</bundles_post_ra>
